<compile_context>
chip_gen: v7x
topology: tpu7x:2x2x1
jax: 0.10.0
libtpu: 0.0.40
codegen_flags: <defaults>
</compile_context>

<pallas_src>
import functools

import jax
import jax.numpy as jnp
from jax import lax
from jax.experimental import pallas as pl
from jax.experimental.pallas import tpu as pltpu

# Layer dims of the PyTorch module.
_H1, _H2, _H3, _HOUT = 5, 10, 15, 1
# Row offset of each packed [W | b] block inside the parameter slab
# (aligned to the 8-sublane tile boundary).
_ROW_OFF = (0, 8, 24, 40)
_SLAB_ROWS = 48
_SLAB_COLS = 128          # lane-padded; holds max(n_features, 15) + 1 columns

# Max batch-tile width in lanes (sweep 2048-8192; 4096 keeps the lane-padded
# x block at 2 MiB/buffer, comfortably inside v5e's 16 MiB default scoped VMEM).
_MAX_TILE = 4096


def _pick_batch_tile(batch):
    """Tile width: multiple of 128, capped at _MAX_TILE, and sized so the
    'parallel' batch grid keeps >=2 steps when the batch allows (v7x 2 TCs)."""
    tiles_for_two_steps = pl.cdiv(batch, 2 * 128)
    return 128 * max(1, min(_MAX_TILE // 128, tiles_for_two_steps))


def _mlp_kernel(x_ref, p_ref, o_ref, *, n_features):
    """One batch tile of the 4-layer MLP.

    x_ref : (TB, n_features)  natural torch layout (batch on sublanes)
    p_ref : (48, 128)         packed [W | b] per layer
    o_ref : (1, TB)           lane-dense output tile
    """
    x = x_ref[...].astype(jnp.float32)                # accepts f32 or bf16 streams
    p = p_ref[...]

    def wb(row0, out_dim, in_dim):
        w = p[row0:row0 + out_dim, 0:in_dim]              # (out, in) torch layout
        b = p[row0:row0 + out_dim, in_dim:in_dim + 1]     # (out, 1)
        return w, b

    # Layer 1: contract x's feature axis directly -> (H1, TB).  This fuses the
    # batch-major -> feature-major relayout into the matmul (no host transpose).
    w1, b1 = wb(_ROW_OFF[0], _H1, n_features)
    z = lax.dot_general(w1, x, (((1,), (1,)), ((), ())),
                        preferred_element_type=jnp.float32) + b1
    z = jnp.maximum(z, 0.0)

    def layer(z, row0, out_dim, in_dim, relu):
        w, b = wb(row0, out_dim, in_dim)
        y = jnp.dot(w, z, preferred_element_type=jnp.float32) + b
        return jnp.maximum(y, 0.0) if relu else y

    z = layer(z, _ROW_OFF[1], _H2, _H1, True)
    z = layer(z, _ROW_OFF[2], _H3, _H2, True)
    # TODO(synk): torch.nn.Dropout(p=0.12409...) is identity in eval mode;
    # training-mode stochastic masking is intentionally not reproduced here.
    z = layer(z, _ROW_OFF[3], _HOUT, _H3, False)

    o_ref[...] = z.astype(o_ref.dtype)                # (1, TB) lane-dense store


def pack_params(params):
    """params: 4 x (W (out, in), b (out,)) in torch layout.
    Returns one f32 slab [48, 128] with each layer stored as [W | b]."""
    slab = jnp.zeros((_SLAB_ROWS, _SLAB_COLS), jnp.float32)
    for (w, b), r0 in zip(params, _ROW_OFF):
        out_dim, in_dim = w.shape
        slab = slab.at[r0:r0 + out_dim, 0:in_dim].set(w)
        slab = slab.at[r0:r0 + out_dim, in_dim].set(b)
    return slab


def neural_networks_forward(x, slab):
    """x: (B, n_features) in natural torch layout (f32 or bf16).
    Returns (B, 1) f32."""
    batch, n_features = x.shape
    assert n_features + 1 <= _SLAB_COLS, "n_features too large for packed slab"

    tb = _pick_batch_tile(batch)
    padded = pl.cdiv(batch, tb) * tb
    if padded != batch:
        # Correctness fallback for ragged batches; a no-op (eliminated by XLA)
        # when batch is already a multiple of the tile.
        x = jnp.pad(x, ((0, padded - batch), (0, 0)))

    kernel = functools.partial(_mlp_kernel, n_features=n_features)
    out_t = pl.pallas_call(
        kernel,
        out_shape=jax.ShapeDtypeStruct((1, padded), jnp.float32),
        grid=(padded // tb,),
        in_specs=[
            # streamed x tile in natural (B, F) layout, one per grid step
            pl.BlockSpec((tb, n_features), lambda i: (i, 0)),
            # packed params: constant index_map -> fetched once, VMEM-resident
            pl.BlockSpec((_SLAB_ROWS, _SLAB_COLS), lambda i: (0, 0)),
        ],
        out_specs=pl.BlockSpec((1, tb), lambda i: (0, i)),
        compiler_params=pltpu.CompilerParams(
            dimension_semantics=("parallel",)),
    )(x, slab)

    return out_t[0, :batch].reshape(batch, 1)         # back to (B, 1)


def xavier_uniform(key, fan_out, fan_in):
    # matches torch.nn.init.xavier_uniform_ (gain=1) on a (fan_out, fan_in) weight
    limit = jnp.sqrt(6.0 / (fan_in + fan_out))
    return jax.random.uniform(key, (fan_out, fan_in), jnp.float32, -limit, limit)


def init_params(key, n_features):
    dims = [(_H1, n_features), (_H2, _H1), (_H3, _H2), (_HOUT, _H3)]
    keys = jax.random.split(key, 4)
    params = []
    for (fan_out, fan_in), k in zip(dims, keys):
        w = xavier_uniform(k, fan_out, fan_in)        # torch layout (out, in)
        b = jnp.zeros((fan_out,), jnp.float32)        # zeros_
        params.append((w, b))
    return params


if __name__ == "__main__":
    key = jax.random.PRNGKey(0)
    n_features = 16
    batch = 2048       # -> tile = 1024 lanes, 2 grid steps (exercises pipelining
                       #    and keeps both v7x TensorCores busy)

    kx, kp = jax.random.split(key)
    x = jax.random.normal(kx, (batch, n_features), jnp.float32)
    params = init_params(kp, n_features)
    slab = pack_params(params)

    out = jax.block_until_ready(neural_networks_forward(x, slab))

    # reference in plain JAX (dropout is identity in eval mode)
    def ref(x, params):
        (w1, b1), (w2, b2), (w3, b3), (w4, b4) = params
        z = jnp.maximum(x @ w1.T + b1, 0.0)
        z = jnp.maximum(z @ w2.T + b2, 0.0)
        z = jnp.maximum(z @ w3.T + b3, 0.0)
        return z @ w4.T + b4

    expected = ref(x, params)
    assert out.shape == (batch, 1)
    assert jnp.allclose(out, expected, atol=1e-5), "mismatch vs reference"

    print("KERNEL_OK")
</pallas_src>

<mosaic_0001>
module attributes {stable_mosaic.version = 11 : i64} {
  func.func @_mlp_kernel(%arg0: i32, %arg1: memref<1024x16xf32, #tpu.memory_space<vmem>>, %arg2: memref<48x128xf32, #tpu.memory_space<vmem>>, %arg3: memref<1x1024xf32, #tpu.memory_space<vmem>>) attributes {dimension_semantics = [#tpu.dimension_semantics<parallel>], iteration_bounds = array<i64: 2>, scalar_prefetch = 0 : i64, scratch_operands = 0 : i64, tpu.core_type = #tpu.core_type<tc>, window_params = [{transform_indices = @transform_0, window_bounds = array<i64: 1024, 16>}, {pipeline_mode = #tpu.pipeline_mode<synchronous>, transform_indices = @transform_1, window_bounds = array<i64: 48, 128>}, {transform_indices = @transform_2, window_bounds = array<i64: 1, 1024>}]} {
    %c0 = arith.constant 0 : index
    %c0_0 = arith.constant 0 : index
    %0 = vector.load %arg1[%c0, %c0_0] : memref<1024x16xf32, #tpu.memory_space<vmem>>, vector<1024x16xf32>
    %c0_1 = arith.constant 0 : index
    %c0_2 = arith.constant 0 : index
    %1 = vector.load %arg2[%c0_1, %c0_2] : memref<48x128xf32, #tpu.memory_space<vmem>>, vector<48x128xf32>
    %2 = vector.extract_strided_slice %1 {offsets = [0, 0], sizes = [5, 16], strides = [1, 1]} : vector<48x128xf32> to vector<5x16xf32>
    %3 = vector.extract_strided_slice %1 {offsets = [0, 16], sizes = [5, 1], strides = [1, 1]} : vector<48x128xf32> to vector<5x1xf32>
    %cst = arith.constant dense<0.000000e+00> : vector<5x1024xf32>
    %4 = tpu.matmul %2, %0, %cst {dimension_numbers = #tpu.dot_dimension_numbers<[1], [1], [0], [0], [0, 0, 1, 0], [], []>} : vector<5x16xf32>, vector<1024x16xf32>, vector<5x1024xf32> -> vector<5x1024xf32>
    %5 = vector.broadcast %3 : vector<5x1xf32> to vector<5x1024xf32>
    %6 = arith.addf %4, %5 : vector<5x1024xf32>
    %cst_3 = arith.constant 0.000000e+00 : f32
    %7 = vector.broadcast %cst_3 : f32 to vector<5x1024xf32>
    %8 = arith.maximumf %6, %7 : vector<5x1024xf32>
    %9 = vector.extract_strided_slice %1 {offsets = [8, 0], sizes = [10, 5], strides = [1, 1]} : vector<48x128xf32> to vector<10x5xf32>
    %10 = vector.extract_strided_slice %1 {offsets = [8, 5], sizes = [10, 1], strides = [1, 1]} : vector<48x128xf32> to vector<10x1xf32>
    %cst_4 = arith.constant dense<0.000000e+00> : vector<10x1024xf32>
    %11 = tpu.matmul %9, %8, %cst_4 {dimension_numbers = #tpu.dot_dimension_numbers<[1], [0], [0], [1], [0, 0, 1, 1], [], []>} : vector<10x5xf32>, vector<5x1024xf32>, vector<10x1024xf32> -> vector<10x1024xf32>
    %12 = vector.broadcast %10 : vector<10x1xf32> to vector<10x1024xf32>
    %13 = arith.addf %11, %12 : vector<10x1024xf32>
    %cst_5 = arith.constant 0.000000e+00 : f32
    %14 = vector.broadcast %cst_5 : f32 to vector<10x1024xf32>
    %15 = arith.maximumf %13, %14 : vector<10x1024xf32>
    %16 = vector.extract_strided_slice %1 {offsets = [24, 0], sizes = [15, 10], strides = [1, 1]} : vector<48x128xf32> to vector<15x10xf32>
    %17 = vector.extract_strided_slice %1 {offsets = [24, 10], sizes = [15, 1], strides = [1, 1]} : vector<48x128xf32> to vector<15x1xf32>
    %cst_6 = arith.constant dense<0.000000e+00> : vector<15x1024xf32>
    %18 = tpu.matmul %16, %15, %cst_6 {dimension_numbers = #tpu.dot_dimension_numbers<[1], [0], [0], [1], [0, 0, 1, 1], [], []>} : vector<15x10xf32>, vector<10x1024xf32>, vector<15x1024xf32> -> vector<15x1024xf32>
    %19 = vector.broadcast %17 : vector<15x1xf32> to vector<15x1024xf32>
    %20 = arith.addf %18, %19 : vector<15x1024xf32>
    %cst_7 = arith.constant 0.000000e+00 : f32
    %21 = vector.broadcast %cst_7 : f32 to vector<15x1024xf32>
    %22 = arith.maximumf %20, %21 : vector<15x1024xf32>
    %23 = vector.extract_strided_slice %1 {offsets = [40, 0], sizes = [1, 15], strides = [1, 1]} : vector<48x128xf32> to vector<1x15xf32>
    %24 = vector.extract_strided_slice %1 {offsets = [40, 15], sizes = [1, 1], strides = [1, 1]} : vector<48x128xf32> to vector<1x1xf32>
    %cst_8 = arith.constant dense<0.000000e+00> : vector<1x1024xf32>
    %25 = tpu.matmul %23, %22, %cst_8 {dimension_numbers = #tpu.dot_dimension_numbers<[1], [0], [0], [1], [0, 0, 1, 1], [], []>} : vector<1x15xf32>, vector<15x1024xf32>, vector<1x1024xf32> -> vector<1x1024xf32>
    %26 = vector.broadcast %24 : vector<1x1xf32> to vector<1x1024xf32>
    %27 = arith.addf %25, %26 : vector<1x1024xf32>
    %c0_9 = arith.constant 0 : index
    %c0_10 = arith.constant 0 : index
    %28 = vector.load %arg3[%c0_9, %c0_10] : memref<1x1024xf32, #tpu.memory_space<vmem>>, vector<1x1024xf32>
    tpu.vector_store %arg3[%c0_9, %c0_10], %27 {strides = array<i32>} : memref<1x1024xf32, #tpu.memory_space<vmem>>, vector<1x1024xf32>,
    return
  }
  func.func @transform_0(%arg0: i32) -> (i32, i32) {
    %c0_i32 = arith.constant 0 : i32
    %c0_i32_0 = arith.constant 0 : i32
    return %arg0, %c0_i32 : i32, i32
  }
  func.func @transform_1(%arg0: i32) -> (i32, i32) {
    %c0_i32 = arith.constant 0 : i32
    %c0_i32_0 = arith.constant 0 : i32
    %c0_i32_1 = arith.constant 0 : i32
    return %c0_i32, %c0_i32_0 : i32, i32
  }
  func.func @transform_2(%arg0: i32) -> (i32, i32) {
    %c0_i32 = arith.constant 0 : i32
    %c0_i32_0 = arith.constant 0 : i32
    return %c0_i32, %arg0 : i32, i32
  }
}

</mosaic_0001>

<bundles_post_ra>
// kernel: tpu_custom_call.1
= control target key start
LH: loop header
LB: loop body
LE: loop exit
PB: predicated region body
PF: predicated region fallthrough
CT: control target
= control target key end

     0   :  { %7 = vsyncpa [#allocation3], 0  ;;  %s3356_s0 = inlined_call_operand.vmem [shape: f32[2048,16], index: 0, kind: input, shape index: {}]   ;;  %s3357_s1 = inlined_call_operand.vmem [shape: f32[48,128], index: 1, kind: input, shape index: {}]   ;;  %s3358_s2 = inlined_call_operand.hbm [shape: f32[1,2048], index: 2, kind: output, shape index: {}]  }
   0x1   :  { %9 = vsyncpa [#allocation3 + $0x1], 0  ;;  %s2844_s9 = smov 0   ;;  %s2846_s10 = smov 0  }
   0x2   :  { %s2848_s11 = smov 0   ;;  %s2850_s12 = smov 0  }
   0x3 LB: > { %s2140_s13 = sadd.s32 4294967295, %s2819_s12   ;;  %s2141_s14 = sadd.s32 4294967294, %s2819_s12   ;;  %s2819_s12 = sphi %s2850_s12, %s3370_s12   ;;  %s2815_s11 = sphi %s2848_s11, %s3369_s11   ;;  %s2811_s10 = sphi %s2846_s10, %s3368_s10   ;;  %s2807_s9 = sphi %s2844_s9, %s3367_s9  }
   0x4   : > { %s2867_s15 = sadd.s32 1, %s2819_s12   ;;  %s69_s16 = sadd.s32 1, %s2815_s11 }
   0x5   : > { %s66_s17 = ssub.s32 %s2819_s12, %s2867_s15  ;;  %p79_p0 = scmp.ne.s32.totalorder %s2815_s11, %s2811_s10 }
   0x6   : > { %p67_p1 = scmp.eq.s32.totalorder %s66_s17, 0  ;;  %p80_p2 = scmp.eq.s32.totalorder %s2140_s13, 1 }
   0x7   : > { %p85_p3 = scmp.ne.s32.totalorder %s2811_s10, %s2807_s9  ;;  %p86_p4 = scmp.eq.s32.totalorder %s2141_s14, 1 }
   0x8   : > { %s2877_s18 = scalar_select %p67_p1, %s2815_s11, %s69_s16  }
   0x9   : > { %p2879_p5 = por %p80_p2, %p79_p0  ;;  %p2883_p6 = por %p86_p4, %p85_p3 }
   0xa   : > { %p2144_p7 = scmp.ge.s32.totalorder %s2819_s12, 1  ;;  %p116_p8 = scmp.lt.s32.totalorder %s2819_s12, 3 }
   0xc   : > { %p117_p9 = pnand %p2144_p7, %p116_p8 }
   0xd   : > { %s2889_s21 = sshll.u32 (!%p117_p9), %s2140_s13, 7  ;;  %vm284_vm0 = vcmask (!%p117_p9), 130048   ;;  %v2894_v0 = vld [vmem:[%s3357_s1] sm:$0xff] (!%p117_p9)  ;;  %v2821_v23 = vmov (!%p117_p9), 16   ;;  %v275_v1 = vld [vmem:[%s3357_s1 + $0x10] sm:$0xff] (!%p117_p9)  ;;  %vm978_vm2 = vcmask (!%p117_p9), 1044480  }
   0xe   : > { %120 = sbr.rel (%p117_p9) target bundleno = 1070 (0x42e), region = 28  ;;  %p139_p10 = scmp.lt.s32.totalorder (!%p117_p9), %s2889_s21, 255  ;;  %2362 = vmatprep.mubr.msk.f32.mxu0 (!%p117_p9), %vm284_vm0, %v2894_v0  ;;  %2396 = vmatprep.mubr.msk.f32.mxu1 (!%p117_p9), %vm284_vm0, %v2894_v0  ;;  %vm2909_vm1 = vmpackc.low (!%p117_p9), %vm284_vm0, %vm284_vm0  ;;  %vm973_vm3 = vcmask (!%p117_p9), 39936   ;;  %vm1342_vm4 = vcmask (!%p117_p9), 1041408   ;;  %vm2825_vm5 = vmmov (!%p117_p9), 1   ;;  %vm1337_vm7 = vcmask (!%p117_p9), 80896  }
   0xf   : > { %2752 = vset.pattern.permute.xlu0 (!%p117_p9), %v2821_v23  ;;  %vm3228_vm6 = vmpackc.low (!%p117_p9), %vm1342_vm4, %vm2825_vm5  ;;  %vm1699_vm8 = vcmask (!%p117_p9), 1046528   ;;  %vm1696_vm10 = vcmask (!%p117_p9), 121856   ;;  %s135_s16 = sand.u32 (!%p117_p9), 1, %s2811_s10   ;;  %s3314_s26 = scalar_lea.hbm (!%p117_p9), %s3358_s2, %s2889_s21 }
  0x10   : > { %281 = vperm.xlu0 (!%p117_p9), %2752, %v2894_v0   ;;  %vm3279_vm9 = vmpackc.low (!%p117_p9), %vm1699_vm8, %vm2825_vm5  ;;  %s2145_s17 = sshll.u32 (!%p117_p9), %s135_s16, 3  ;;  %s2068_s27 = scalar_lea.sflag (!%p117_p9), [#allocation3], %s135_s16 }
  0x11   : > { %s137_s22 = scalar_lea.vmem (!%p117_p9), [#allocation2], %s2145_s17  ;;  %s2828_s29 = smov (!%p117_p9), [#allocation2]  }
  0x12   : > { %s2082_s23 = sshll.u32 (!%p117_p9), %s137_s22, 4  ;;  %s2761_s30 = sshll.u32 (!%p117_p9), %s2828_s29, 4  ;;  %s3316_s23 = int_to_ptr.vmem [resolvable:$true] %s2082_s23  ;;  %s2762_s30 = int_to_ptr.vmem [resolvable:$false] %s2761_s30 }
  0x13   : > { %s2763_s3 = scalar_lea.vmem (!%p117_p9), %s2762_s30, 256  ;;  %p2764_p0 = scmp.lt.s32.totalorder (!%p117_p9), %s3316_s23, %s2762_s30 }
  0x15   : > { %s140_s24 = scalar_select %p139_p10, %s2889_s21, 255 }
  0x17   : > { %s2147_s25 = sshll.u32 %s140_s24, 3 }
  0x18   : > { %s2905_s28 = scalar_lea.vmem %s3356_s0, %s2147_s25 }
  0x19   : > { %v161_v2 = vld [vmem:[%s2905_s28 + $0x80] sm:$0xff]  ;;  %v162_v3 = vld [vmem:[%s2905_s28 + $0x88] sm:$0xff]  ;;  %v163_v13 = vld [vmem:[%s2905_s28 + $0x90] sm:$0xff] }
  0x1a   : > { %v193_v4 = vld [vmem:[%s2905_s28 + $0x180] sm:$0xff]  ;;  %v2466_v5 = vpack.c.bf16 %v162_v3, %v161_v2  ;;  %v194_v6 = vld [vmem:[%s2905_s28 + $0x188] sm:$0xff]  ;;  %v164_v15 = vld [vmem:[%s2905_s28 + $0x98] sm:$0xff] }
  0x1b   : > { %v145_v7 = vld [vmem:[%s2905_s28] sm:$0xff]  ;;  %v146_v8 = vld [vmem:[%s2905_s28 + $0x8] sm:$0xff]  ;;  %v2514_v9 = vpack.c.bf16 %v194_v6, %v193_v4  ;;  %v195_v16 = vld [vmem:[%s2905_s28 + $0x190] sm:$0xff]  ;;  %v2472_v18 = vpack.c.bf16 %v164_v15, %v163_v13 }
  0x1c   : > { %v2469_v10 = vpack.c.bf16 %v146_v8, %v145_v7  ;;  %v177_v11 = vld [vmem:[%s2905_s28 + $0x100] sm:$0xff]  ;;  %v178_v12 = vld [vmem:[%s2905_s28 + $0x108] sm:$0xff]  ;;  %2468 = vmatprep.subr.msk.bf16.mxu0 %vm2909_vm1, %v2466_v5  ;;  %v196_v17 = vld [vmem:[%s2905_s28 + $0x198] sm:$0xff] }
  0x1d   : > { %v2517_v14 = vpack.c.bf16 %v178_v12, %v177_v11  ;;  %2516 = vmatprep.subr.msk.bf16.mxu1 %vm2909_vm1, %v2514_v9  ;;  %v2520_v19 = vpack.c.bf16 %v196_v17, %v195_v16  ;;  %v147_v20 = vld [vmem:[%s2905_s28 + $0x10] sm:$0xff]  ;;  %v148_v21 = vld [vmem:[%s2905_s28 + $0x18] sm:$0xff]  ;;  %v165_v25 = vld [vmem:[%s2905_s28 + $0xa0] sm:$0xff] }
  0x1e   : > { %2471 = vmatpush3.bf16.xpose.msk.msra.mxu0 %vm2909_vm1, %v2469_v10  ;;  %v179_v22 = vld [vmem:[%s2905_s28 + $0x110] sm:$0xff]  ;;  %v180_v24 = vld [vmem:[%s2905_s28 + $0x118] sm:$0xff]  ;;  %v166_v26 = vld [vmem:[%s2905_s28 + $0xa8] sm:$0xff]  ;;  %v2475_v29 = vpack.c.bf16 %v148_v21, %v147_v20 }
  0x1f   : > { %2519 = vmatpush3.bf16.xpose.msk.msra.mxu1 %vm2909_vm1, %v2517_v14  ;;  %2474 = vmatprep.subr.msk.bf16.mxu0 %vm2909_vm1, %v2472_v18  ;;  %v197_v27 = vld [vmem:[%s2905_s28 + $0x1a0] sm:$0xff]  ;;  %v198_v28 = vld [vmem:[%s2905_s28 + $0x1a8] sm:$0xff]  ;;  %v2523_v30 = vpack.c.bf16 %v180_v24, %v179_v22  ;;  %v2478_v31 = vpack.c.bf16 %v166_v26, %v165_v25  ;;  %v167_v37 = vld [vmem:[%s2905_s28 + $0xb0] sm:$0xff] }
  0x20   : > { %2522 = vmatprep.subr.msk.bf16.mxu1 %vm2909_vm1, %v2520_v19  ;;  %v2526_v32 = vpack.c.bf16 %v198_v28, %v197_v27  ;;  %v149_v33 = vld [vmem:[%s2905_s28 + $0x20] sm:$0xff]  ;;  %v150_v34 = vld [vmem:[%s2905_s28 + $0x28] sm:$0xff]  ;;  %v168_v38 = vld [vmem:[%s2905_s28 + $0xb8] sm:$0xff] }
  0x21   : > { %v181_v35 = vld [vmem:[%s2905_s28 + $0x120] sm:$0xff]  ;;  %v182_v36 = vld [vmem:[%s2905_s28 + $0x128] sm:$0xff]  ;;  %v199_v39 = vld [vmem:[%s2905_s28 + $0x1b0] sm:$0xff]  ;;  %v2481_v41 = vpack.c.bf16 %v150_v34, %v149_v33  ;;  %v2484_v43 = vpack.c.bf16 %v168_v38, %v167_v37 }
  0x22   : > { %v200_v40 = vld [vmem:[%s2905_s28 + $0x1b8] sm:$0xff]  ;;  %v2529_v42 = vpack.c.bf16 %v182_v36, %v181_v35  ;;  %v151_v45 = vld [vmem:[%s2905_s28 + $0x30] sm:$0xff]  ;;  %v169_v49 = vld [vmem:[%s2905_s28 + $0xc0] sm:$0xff] }
  0x23   : > { %v2532_v44 = vpack.c.bf16 %v200_v40, %v199_v39  ;;  %v152_v46 = vld [vmem:[%s2905_s28 + $0x38] sm:$0xff]  ;;  %v183_v47 = vld [vmem:[%s2905_s28 + $0x130] sm:$0xff]  ;;  %v170_v50 = vld [vmem:[%s2905_s28 + $0xc8] sm:$0xff] }
  0x24   : > { %v184_v48 = vld [vmem:[%s2905_s28 + $0x138] sm:$0xff]  ;;  %v201_v51 = vld [vmem:[%s2905_s28 + $0x1c0] sm:$0xff]  ;;  %v202_v52 = vld [vmem:[%s2905_s28 + $0x1c8] sm:$0xff]  ;;  %v2487_v53 = vpack.c.bf16 %v152_v46, %v151_v45  ;;  %v2490_v55 = vpack.c.bf16 %v170_v50, %v169_v49 }
  0x25   : > { %v2535_v54 = vpack.c.bf16 %v184_v48, %v183_v47  ;;  %v2538_v56 = vpack.c.bf16 %v202_v52, %v201_v51  ;;  %v153_v57 = vld [vmem:[%s2905_s28 + $0x40] sm:$0xff]  ;;  %v154_v58 = vld [vmem:[%s2905_s28 + $0x48] sm:$0xff]  ;;  %v171_v61 = vld [vmem:[%s2905_s28 + $0xd0] sm:$0xff] }
  0x26   : > { %2477 = vmatpush3.bf16.xpose.msk.msra.mxu0 %vm2909_vm1, %v2475_v29  ;;  %v185_v59 = vld [vmem:[%s2905_s28 + $0x140] sm:$0xff]  ;;  %v186_v60 = vld [vmem:[%s2905_s28 + $0x148] sm:$0xff]  ;;  %v172_v62 = vld [vmem:[%s2905_s28 + $0xd8] sm:$0xff]  ;;  %v2493_v3 = vpack.c.bf16 %v154_v58, %v153_v57 }
  0x27   : > { %2525 = vmatpush3.bf16.xpose.msk.msra.mxu1 %vm2909_vm1, %v2523_v30  ;;  %2480 = vmatprep.subr.msk.bf16.mxu0 %vm2909_vm1, %v2478_v31  ;;  %v203_v63 = vld [vmem:[%s2905_s28 + $0x1d0] sm:$0xff]  ;;  %v204_v2 = vld [vmem:[%s2905_s28 + $0x1d8] sm:$0xff]  ;;  %v2541_v4 = vpack.c.bf16 %v186_v60, %v185_v59  ;;  %v2496_v5 = vpack.c.bf16 %v172_v62, %v171_v61  ;;  %v173_v11 = vld [vmem:[%s2905_s28 + $0xe0] sm:$0xff] }
  0x28   : > { %2528 = vmatprep.subr.msk.bf16.mxu1 %vm2909_vm1, %v2526_v32  ;;  %v2544_v6 = vpack.c.bf16 %v204_v2, %v203_v63  ;;  %v155_v7 = vld [vmem:[%s2905_s28 + $0x50] sm:$0xff]  ;;  %v156_v8 = vld [vmem:[%s2905_s28 + $0x58] sm:$0xff]  ;;  %v174_v12 = vld [vmem:[%s2905_s28 + $0xe8] sm:$0xff] }
  0x29   : > { %v187_v9 = vld [vmem:[%s2905_s28 + $0x150] sm:$0xff]  ;;  %v188_v10 = vld [vmem:[%s2905_s28 + $0x158] sm:$0xff]  ;;  %v205_v13 = vld [vmem:[%s2905_s28 + $0x1e0] sm:$0xff]  ;;  %v2499_v15 = vpack.c.bf16 %v156_v8, %v155_v7  ;;  %v2502_v17 = vpack.c.bf16 %v174_v12, %v173_v11 }
  0x2a   : > { %v206_v14 = vld [vmem:[%s2905_s28 + $0x1e8] sm:$0xff]  ;;  %v2547_v16 = vpack.c.bf16 %v188_v10, %v187_v9  ;;  %v157_v19 = vld [vmem:[%s2905_s28 + $0x60] sm:$0xff]  ;;  %v175_v23 = vld [vmem:[%s2905_s28 + $0xf0] sm:$0xff] }
  0x2b   : > { %v2550_v18 = vpack.c.bf16 %v206_v14, %v205_v13  ;;  %v158_v20 = vld [vmem:[%s2905_s28 + $0x68] sm:$0xff]  ;;  %v189_v21 = vld [vmem:[%s2905_s28 + $0x160] sm:$0xff]  ;;  %v176_v24 = vld [vmem:[%s2905_s28 + $0xf8] sm:$0xff] }
  0x2c   : > { %v190_v22 = vld [vmem:[%s2905_s28 + $0x168] sm:$0xff]  ;;  %v207_v25 = vld [vmem:[%s2905_s28 + $0x1f0] sm:$0xff]  ;;  %v208_v26 = vld [vmem:[%s2905_s28 + $0x1f8] sm:$0xff]  ;;  %v2505_v27 = vpack.c.bf16 %v158_v20, %v157_v19  ;;  %v2508_v29 = vpack.c.bf16 %v176_v24, %v175_v23 }
  0x2d   : > { %v2553_v28 = vpack.c.bf16 %v190_v22, %v189_v21  ;;  %v2556_v30 = vpack.c.bf16 %v208_v26, %v207_v25  ;;  %v159_v31 = vld [vmem:[%s2905_s28 + $0x70] sm:$0xff]  ;;  %v160_v32 = vld [vmem:[%s2905_s28 + $0x78] sm:$0xff]  ;;  %v225_v35 = vld [vmem:[%s2905_s28 + $0x280] sm:$0xff] }
  0x2e   : > { %2483 = vmatpush3.bf16.xpose.msk.msra.mxu0 %vm2909_vm1, %v2481_v41  ;;  %v191_v33 = vld [vmem:[%s2905_s28 + $0x170] sm:$0xff]  ;;  %v192_v34 = vld [vmem:[%s2905_s28 + $0x178] sm:$0xff]  ;;  %v226_v36 = vld [vmem:[%s2905_s28 + $0x288] sm:$0xff]  ;;  %v2511_v39 = vpack.c.bf16 %v160_v32, %v159_v31 }
  0x2f   : > { %2531 = vmatpush3.bf16.xpose.msk.msra.mxu1 %vm2909_vm1, %v2529_v42  ;;  %2486 = vmatprep.subr.msk.bf16.mxu0 %vm2909_vm1, %v2484_v43  ;;  %v257_v37 = vld [vmem:[%s2905_s28 + $0x380] sm:$0xff]  ;;  %v258_v38 = vld [vmem:[%s2905_s28 + $0x388] sm:$0xff]  ;;  %v2559_v40 = vpack.c.bf16 %v192_v34, %v191_v33  ;;  %v2562_v41 = vpack.c.bf16 %v226_v36, %v225_v35  ;;  %v227_v47 = vld [vmem:[%s2905_s28 + $0x290] sm:$0xff] }
  0x30   : > { %2534 = vmatprep.subr.msk.bf16.mxu1 %vm2909_vm1, %v2532_v44  ;;  %v2610_v42 = vpack.c.bf16 %v258_v38, %v257_v37  ;;  %v209_v43 = vld [vmem:[%s2905_s28 + $0x200] sm:$0xff]  ;;  %v210_v44 = vld [vmem:[%s2905_s28 + $0x208] sm:$0xff]  ;;  %v228_v48 = vld [vmem:[%s2905_s28 + $0x298] sm:$0xff] }
  0x31   : > { %v241_v45 = vld [vmem:[%s2905_s28 + $0x300] sm:$0xff]  ;;  %v242_v46 = vld [vmem:[%s2905_s28 + $0x308] sm:$0xff]  ;;  %v259_v49 = vld [vmem:[%s2905_s28 + $0x390] sm:$0xff]  ;;  %v2565_v51 = vpack.c.bf16 %v210_v44, %v209_v43 }
  0x32   : > { %v260_v50 = vld [vmem:[%s2905_s28 + $0x398] sm:$0xff]  ;;  %v2613_v52 = vpack.c.bf16 %v242_v46, %v241_v45  ;;  %v243_v57 = vld [vmem:[%s2905_s28 + $0x310] sm:$0xff]  ;;  %v229_v59 = vld [vmem:[%s2905_s28 + $0x2a0] sm:$0xff] }
  0x33   : > { %v244_v58 = vld [vmem:[%s2905_s28 + $0x318] sm:$0xff]  ;;  %v230_v60 = vld [vmem:[%s2905_s28 + $0x2a8] sm:$0xff]  ;;  %v261_v61 = vld [vmem:[%s2905_s28 + $0x3a0] sm:$0xff] }
  0x34   : > { %v262_v62 = vld [vmem:[%s2905_s28 + $0x3a8] sm:$0xff]  ;;  %v2619_v2 = vpack.c.bf16 %v244_v58, %v243_v57  ;;  %v245_v7 = vld [vmem:[%s2905_s28 + $0x320] sm:$0xff]  ;;  %v231_v9 = vld [vmem:[%s2905_s28 + $0x2b0] sm:$0xff] }
  0x35   : > { %v246_v8 = vld [vmem:[%s2905_s28 + $0x328] sm:$0xff]  ;;  %v232_v10 = vld [vmem:[%s2905_s28 + $0x2b8] sm:$0xff]  ;;  %v263_v11 = vld [vmem:[%s2905_s28 + $0x3b0] sm:$0xff] }
  0x36   : > { %2489 = vmatpush3.bf16.xpose.msk.msra.mxu0 %vm2909_vm1, %v2487_v53  ;;  %v2568_v53 = vpack.c.bf16 %v228_v48, %v227_v47  ;;  %v264_v12 = vld [vmem:[%s2905_s28 + $0x3b8] sm:$0xff]  ;;  %v2625_v14 = vpack.c.bf16 %v246_v8, %v245_v7  ;;  %v247_v19 = vld [vmem:[%s2905_s28 + $0x330] sm:$0xff]  ;;  %v233_v21 = vld [vmem:[%s2905_s28 + $0x2c0] sm:$0xff] }
  0x37   : > { %2537 = vmatpush3.bf16.xpose.msk.msra.mxu1 %vm2909_vm1, %v2535_v54  ;;  %2492 = vmatprep.subr.msk.bf16.mxu0 %vm2909_vm1, %v2490_v55  ;;  %v2616_v54 = vpack.c.bf16 %v260_v50, %v259_v49  ;;  %v211_v55 = vld [vmem:[%s2905_s28 + $0x210] sm:$0xff]  ;;  %v248_v20 = vld [vmem:[%s2905_s28 + $0x338] sm:$0xff]  ;;  %v234_v22 = vld [vmem:[%s2905_s28 + $0x2c8] sm:$0xff] }
  0x38   : > { %2540 = vmatprep.subr.msk.bf16.mxu1 %vm2909_vm1, %v2538_v56  ;;  %v212_v56 = vld [vmem:[%s2905_s28 + $0x218] sm:$0xff]  ;;  %v265_v23 = vld [vmem:[%s2905_s28 + $0x3c0] sm:$0xff]  ;;  %v266_v24 = vld [vmem:[%s2905_s28 + $0x3c8] sm:$0xff]  ;;  %v2631_v26 = vpack.c.bf16 %v248_v20, %v247_v19 }
  0x39   : > { %v2571_v63 = vpack.c.bf16 %v212_v56, %v211_v55  ;;  %v249_v31 = vld [vmem:[%s2905_s28 + $0x340] sm:$0xff]  ;;  %v250_v32 = vld [vmem:[%s2905_s28 + $0x348] sm:$0xff]  ;;  %v235_v33 = vld [vmem:[%s2905_s28 + $0x2d0] sm:$0xff] }
  0x3a   : > { %v236_v34 = vld [vmem:[%s2905_s28 + $0x2d8] sm:$0xff]  ;;  %v267_v35 = vld [vmem:[%s2905_s28 + $0x3d0] sm:$0xff]  ;;  %v2637_v38 = vpack.c.bf16 %v250_v32, %v249_v31  ;;  %v237_v45 = vld [vmem:[%s2905_s28 + $0x2e0] sm:$0xff] }
  0x3b   : > { %v268_v36 = vld [vmem:[%s2905_s28 + $0x3d8] sm:$0xff]  ;;  %v251_v43 = vld [vmem:[%s2905_s28 + $0x350] sm:$0xff]  ;;  %v238_v46 = vld [vmem:[%s2905_s28 + $0x2e8] sm:$0xff] }
  0x3c   : > { %v252_v44 = vld [vmem:[%s2905_s28 + $0x358] sm:$0xff]  ;;  %v269_v47 = vld [vmem:[%s2905_s28 + $0x3e0] sm:$0xff]  ;;  %v270_v48 = vld [vmem:[%s2905_s28 + $0x3e8] sm:$0xff] }
  0x3d   : > { %v2643_v50 = vpack.c.bf16 %v252_v44, %v251_v43  ;;  %v253_v55 = vld [vmem:[%s2905_s28 + $0x360] sm:$0xff]  ;;  %v254_v56 = vld [vmem:[%s2905_s28 + $0x368] sm:$0xff]  ;;  %v239_v57 = vld [vmem:[%s2905_s28 + $0x2f0] sm:$0xff] }
  0x3e   : > { %2495 = vmatpush3.bf16.xpose.msk.msra.mxu0 %vm2909_vm1, %v2493_v3  ;;  %v2574_v3 = vpack.c.bf16 %v230_v60, %v229_v59  ;;  %v240_v58 = vld [vmem:[%s2905_s28 + $0x2f8] sm:$0xff]  ;;  %v271_v59 = vld [vmem:[%s2905_s28 + $0x3f0] sm:$0xff] }
  0x3f   : > { %2543 = vmatpush3.bf16.xpose.msk.msra.mxu1 %vm2909_vm1, %v2541_v4  ;;  %2498 = vmatprep.subr.msk.bf16.mxu0 %vm2909_vm1, %v2496_v5  ;;  %v2622_v4 = vpack.c.bf16 %v262_v62, %v261_v61  ;;  %v213_v5 = vld [vmem:[%s2905_s28 + $0x220] sm:$0xff]  ;;  %v272_v60 = vld [vmem:[%s2905_s28 + $0x3f8] sm:$0xff]  ;;  %v2649_v62 = vpack.c.bf16 %v254_v56, %v253_v55 }
  0x40   : > { %2546 = vmatprep.subr.msk.bf16.mxu1 %vm2909_vm1, %v2544_v6  ;;  %v214_v6 = vld [vmem:[%s2905_s28 + $0x228] sm:$0xff] }
  0x41   : > { %v2577_v13 = vpack.c.bf16 %v214_v6, %v213_v5  ;;  %v255_v5 = vld [vmem:[%s2905_s28 + $0x370] sm:$0xff]  ;;  %v256_v6 = vld [vmem:[%s2905_s28 + $0x378] sm:$0xff] }
  0x42   : > { %v2655_v8 = vpack.c.bf16 %v256_v6, %v255_v5 }
  0x46   : > { %2501 = vmatpush3.bf16.xpose.msk.msra.mxu0 %vm2909_vm1, %v2499_v15  ;;  %v2580_v15 = vpack.c.bf16 %v232_v10, %v231_v9  ;;  %v2822_v9 = vmov 0.0   ;;  %v274_v10 = vld [vmem:[%s3357_s1 + $0x8] sm:$0xff] }
  0x47   : > { %2549 = vmatpush3.bf16.xpose.msk.msra.mxu1 %vm2909_vm1, %v2547_v16  ;;  %2504 = vmatprep.subr.msk.bf16.mxu0 %vm2909_vm1, %v2502_v17  ;;  %v2628_v16 = vpack.c.bf16 %v264_v12, %v263_v11  ;;  %v215_v17 = vld [vmem:[%s2905_s28 + $0x230] sm:$0xff]  ;;  %v2823_v11 = vmov 5  }
  0x48   : > { %2552 = vmatprep.subr.msk.bf16.mxu1 %vm2909_vm1, %v2550_v18  ;;  %v216_v18 = vld [vmem:[%s2905_s28 + $0x238] sm:$0xff]  ;;  %2754 = vset.pattern.permute.xlu1 %v2823_v11 }
  0x49   : > { %v2583_v25 = vpack.c.bf16 %v216_v18, %v215_v17  ;;  %2753 = vset.pattern.permute.xlu0 %v2823_v11  ;;  %970 = vperm.xlu1 %2754, %v275_v1  }
  0x4a   : > { %965 = vperm.xlu0 %2753, %v274_v10  }
  0x4e   : > { %2507 = vmatpush3.bf16.xpose.msk.msra.mxu0 %vm2909_vm1, %v2505_v27  ;;  %v2586_v27 = vpack.c.bf16 %v234_v22, %v233_v21 }
  0x4f   : > { %2555 = vmatpush3.bf16.xpose.msk.msra.mxu1 %vm2909_vm1, %v2553_v28  ;;  %2510 = vmatprep.subr.msk.bf16.mxu0 %vm2909_vm1, %v2508_v29  ;;  %v2634_v28 = vpack.c.bf16 %v266_v24, %v265_v23  ;;  %v217_v29 = vld [vmem:[%s2905_s28 + $0x240] sm:$0xff] }
  0x50   : > { %2558 = vmatprep.subr.msk.bf16.mxu1 %vm2909_vm1, %v2556_v30  ;;  %v218_v30 = vld [vmem:[%s2905_s28 + $0x248] sm:$0xff] }
  0x51   : > { %v2589_v37 = vpack.c.bf16 %v218_v30, %v217_v29 }
  0x56   : > { %2513 = vmatpush3.bf16.xpose.msk.msra.mxu0 %vm2909_vm1, %v2511_v39  ;;  %v2592_v39 = vpack.c.bf16 %v236_v34, %v235_v33 }
  0x57   : > { %2561 = vmatpush3.bf16.xpose.msk.msra.mxu1 %vm2909_vm1, %v2559_v40  ;;  %2564 = vmatprep.subr.msk.bf16.mxu0 %vm2909_vm1, %v2562_v41  ;;  %v2640_v40 = vpack.c.bf16 %v268_v36, %v267_v35  ;;  %v219_v41 = vld [vmem:[%s2905_s28 + $0x250] sm:$0xff]  ;;  %v3217_v36 = vld [vmem:[%s3357_s1 + $0x18] sm:$0xff] }
  0x58   : > { %2612 = vmatprep.subr.msk.bf16.mxu1 %vm2909_vm1, %v2610_v42  ;;  %v220_v42 = vld [vmem:[%s2905_s28 + $0x258] sm:$0xff] }
  0x59   : > { %v2595_v49 = vpack.c.bf16 %v220_v42, %v219_v41 }
  0x5d   : > { %2363 = vmatmul.mubr.msk.f32.vlgmr.msra.gmra.mrb[0].mxu0 %vm284_vm0, %v2894_v0 }
  0x5e   : > { %2397 = vmatmul.mubr.msk.f32.vlgmr.msra.gmra.mrb[0].mxu1 %vm284_vm0, %v2894_v0  ;;  %2567 = vmatpush3.bf16.xpose.msk.msra.mxu0 %vm2909_vm1, %v2565_v51  ;;  %v2598_v51 = vpack.c.bf16 %v238_v46, %v237_v45 }
  0x5f   : > { %2615 = vmatpush3.bf16.xpose.msk.msra.mxu1 %vm2909_vm1, %v2613_v52  ;;  %2570 = vmatprep.subr.msk.bf16.mxu0 %vm2909_vm1, %v2568_v53  ;;  %v2646_v52 = vpack.c.bf16 %v270_v48, %v269_v47  ;;  %v221_v53 = vld [vmem:[%s2905_s28 + $0x260] sm:$0xff] }
  0x60   : > { %2618 = vmatprep.subr.msk.bf16.mxu1 %vm2909_vm1, %v2616_v54  ;;  %2430 = vmatprep.mubr.msk.f32.mxu0 %vm284_vm0, %v2894_v0  ;;  %v222_v54 = vld [vmem:[%s2905_s28 + $0x268] sm:$0xff] }
  0x61   : > { %2464 = vmatprep.mubr.msk.f32.mxu1 %vm284_vm0, %v2894_v0  ;;  %v2601_v61 = vpack.c.bf16 %v222_v54, %v221_v53 }
  0x66   : > { %2573 = vmatpush3.bf16.xpose.msk.msra.mxu0 %vm2909_vm1, %v2571_v63  ;;  %v2604_v63 = vpack.c.bf16 %v240_v58, %v239_v57 }
  0x67   : > { %2621 = vmatpush3.bf16.xpose.msk.msra.mxu1 %vm2909_vm1, %v2619_v2  ;;  %2576 = vmatprep.subr.msk.bf16.mxu0 %vm2909_vm1, %v2574_v3  ;;  %v2652_v2 = vpack.c.bf16 %v272_v60, %v271_v59  ;;  %v223_v3 = vld [vmem:[%s2905_s28 + $0x270] sm:$0xff] }
  0x68   : > { %2624 = vmatprep.subr.msk.bf16.mxu1 %vm2909_vm1, %v2622_v4  ;;  %v224_v4 = vld [vmem:[%s2905_s28 + $0x278] sm:$0xff]  ;;  %s2757_s28 = scalar_lea.vmem %s3316_s23, 128 }
  0x69   : > { %v2607_v7 = vpack.c.bf16 %v224_v4, %v223_v3  ;;  %p2758_p11 = scmp.ne.s32.totalorder %s3316_s23, %s2757_s28  ;;  %p2765_p1 = scmp.lt.s32.totalorder %s2763_s3, %s2757_s28 }
  0x6b   : > { %p2759_p12 = pnand %p2758_p11, %p2879_p5  ;;  %p2766_p2 = por %p2765_p1, %p2764_p0 }
  0x6d   : > { %p2760_p13 = pneg %p2759_p12 }
  0x6e   : > { %2579 = vmatpush3.bf16.xpose.msk.msra.mxu0 %vm2909_vm1, %v2577_v13 }
  0x6f   : > { %2627 = vmatpush3.bf16.xpose.msk.msra.mxu1 %vm2909_vm1, %v2625_v14  ;;  %2582 = vmatprep.subr.msk.bf16.mxu0 %vm2909_vm1, %v2580_v15  ;;  %p2767_p3 = pnand %p2766_p2, %p2760_p13 }
  0x70   : > { %2630 = vmatprep.subr.msk.bf16.mxu1 %vm2909_vm1, %v2628_v16 }
  0x76   : > { %2585 = vmatpush3.bf16.xpose.msk.msra.mxu0 %vm2909_vm1, %v2583_v25 }
  0x77   : > { %2633 = vmatpush3.bf16.xpose.msk.msra.mxu1 %vm2909_vm1, %v2631_v26  ;;  %2588 = vmatprep.subr.msk.bf16.mxu0 %vm2909_vm1, %v2586_v27 }
  0x78   : > { %2636 = vmatprep.subr.msk.bf16.mxu1 %vm2909_vm1, %v2634_v28 }
  0x7e   : > { %2591 = vmatpush3.bf16.xpose.msk.msra.mxu0 %vm2909_vm1, %v2589_v37  ;;  %v2824_v37 = vmov 10  }
  0x7f   : > { %2639 = vmatpush3.bf16.xpose.msk.msra.mxu1 %vm2909_vm1, %v2637_v38  ;;  %2594 = vmatprep.subr.msk.bf16.mxu0 %vm2909_vm1, %v2592_v39  ;;  %v3223_v38 = vld [vmem:[%s3357_s1 + $0x20] sm:$0xff] }
  0x80   : > { %2642 = vmatprep.subr.msk.bf16.mxu1 %vm2909_vm1, %v2640_v40  ;;  %2755 = vset.pattern.permute.xlu1 %v2824_v37 }
  0x81   : > { %1329 = vperm.xlu1 %2755, %v3217_v36  }
  0x85   : > { %1334 = vperm.xlu1 %2755, %v3223_v38  }
  0x86   : > { %2597 = vmatpush3.bf16.xpose.msk.msra.mxu0 %vm2909_vm1, %v2595_v49 }
  0x87   : > { %2645 = vmatpush3.bf16.xpose.msk.msra.mxu1 %vm2909_vm1, %v2643_v50  ;;  %2600 = vmatprep.subr.msk.bf16.mxu0 %vm2909_vm1, %v2598_v51 }
  0x88   : > { %2648 = vmatprep.subr.msk.bf16.mxu1 %vm2909_vm1, %v2646_v52 }
  0x8e   : > { %2603 = vmatpush3.bf16.xpose.msk.msra.mxu0 %vm2909_vm1, %v2601_v61 }
  0x8f   : > { %2651 = vmatpush3.bf16.xpose.msk.msra.mxu1 %vm2909_vm1, %v2649_v62  ;;  %2606 = vmatprep.subr.msk.bf16.mxu0 %vm2909_vm1, %v2604_v63  ;;  %v282_v12 = vpop.permute.xlu0 %281 }
  0x90   : > { %2654 = vmatprep.subr.msk.bf16.mxu1 %vm2909_vm1, %v2652_v2 }
  0x96   : > { %2609 = vmatpush3.bf16.xpose.msk.msra.mxu0 %vm2909_vm1, %v2607_v7 }
  0x97   : > { %2657 = vmatpush3.bf16.xpose.msk.msra.mxu1 %vm2909_vm1, %v2655_v8 }
  0x9d   : > { %2431 = vmatmul.mubr.msk.f32.vlgmr.msra.gmra.mrb[2].mxu0 %vm284_vm0, %v2894_v0 }
  0x9e   : > { %2465 = vmatmul.mubr.msk.f32.vlgmr.msra.gmra.mrb[2].mxu1 %vm284_vm0, %v2894_v0  ;;  %1067 = vmatprep.mubr.f32.mxu0 %v2822_v9 }
  0x9f   : > { %1144 = vmatprep.mubr.f32.mxu1 %v2822_v9 }
  0xc8   : > { %v971_v45 = vpop.permute.xlu1 %970 }
  0xc9   : > { %v966_v39 = vpop.permute.xlu0 %965 }
 0x100   : > { %v1330_v37 = vpop.permute.xlu1 %1329 }
 0x130   : > { %v737_v0 = vpop.f32.mrb[0].mxu0 }
 0x131   : > { %v808_v13 = vpop.f32.mrb[0].mxu1  ;;  %v739_v14 = vpop.f32.mrb[1].mxu0  ;;  %v738_v15 = vadd.f32 %v737_v0, %v282_v12 }
 0x132   : > { %v740_v16 = vadd.f32 %v739_v14, %v282_v12  ;;  %v810_v17 = vpop.f32.mrb[1].mxu1  ;;  %v809_v18 = vadd.f32 %v808_v13, %v282_v12 }
 0x133   : > { %v811_v19 = vadd.f32 %v810_v17, %v282_v12  ;;  %v955_v20 = vmax.f32 %v738_v15, 0.0 }
 0x134   : > { %v956_v21 = vmax.f32 %v740_v16, 0.0  ;;  %v957_v22 = vmax.f32 %v809_v18, 0.0 }
 0x135   : > { %v958_v23 = vmax.f32 %v811_v19, 0.0 }
 0x136   : > { %2280 = vmatprep.subr.msk.mxu0 %vm978_vm2, %v956_v21 }
 0x137   : > { %2284 = vmatprep.subr.msk.mxu1 %vm978_vm2, %v958_v23  ;;  %2281 = vmatpush1.msk.msra.mxu0 %vm978_vm2, %v955_v20 }
 0x138   : > { %2285 = vmatpush1.msk.msra.mxu1 %vm978_vm2, %v957_v22  ;;  %2282 = vmatmul.mubr.msk.f32.vlgmr.msra.gmra.mrb[4].mxu0 %vm973_vm3, %v274_v10 }
 0x139   : > { %2286 = vmatmul.mubr.msk.f32.vlgmr.msra.gmra.mrb[4].mxu1 %vm973_vm3, %v274_v10  ;;  %1073 = vmatprep.mubr.f32.mxu0 %v2822_v9 }
 0x13a   : > { %1150 = vmatprep.mubr.f32.mxu1 %v2822_v9 }
 0x13c   : > { %2283 = vmatmul.mubr.msk.f32.gmra.mrb[6].mxu0 %vm973_vm3, %v275_v1 }
 0x13d   : > { %2287 = vmatmul.mubr.msk.f32.gmra.mrb[6].mxu1 %vm973_vm3, %v275_v1  ;;  %1221 = vmatprep.mubr.f32.mxu0 %v2822_v9 }
 0x13e   : > { %1298 = vmatprep.mubr.f32.mxu1 %v2822_v9 }
 0x170   : > { %v879_v24 = vpop.f32.mrb[2].mxu0 }
 0x171   : > { %v880_v25 = vadd.f32 %v879_v24, %v282_v12  ;;  %v950_v26 = vpop.f32.mrb[2].mxu1  ;;  %v881_v27 = vpop.f32.mrb[3].mxu0 }
 0x172   : > { %v951_v28 = vadd.f32 %v950_v26, %v282_v12  ;;  %v882_v29 = vadd.f32 %v881_v27, %v282_v12  ;;  %v952_v30 = vpop.f32.mrb[3].mxu1 }
 0x173   : > { %v953_v31 = vadd.f32 %v952_v30, %v282_v12  ;;  %v959_v33 = vmax.f32 %v880_v25, 0.0 }
 0x174   : > { %v960_v32 = vmax.f32 %v882_v29, 0.0  ;;  %v961_v35 = vmax.f32 %v951_v28, 0.0 }
 0x175   : > { %v962_v34 = vmax.f32 %v953_v31, 0.0 }
 0x176   : > { %2288 = vmatprep.subr.msk.mxu0 %vm978_vm2, %v960_v32 }
 0x177   : > { %2292 = vmatprep.subr.msk.mxu1 %vm978_vm2, %v962_v34  ;;  %2289 = vmatpush1.msk.msra.mxu0 %vm978_vm2, %v959_v33 }
 0x178   : > { %2293 = vmatpush1.msk.msra.mxu1 %vm978_vm2, %v961_v35  ;;  %2290 = vmatmul.mubr.msk.f32.vlgmr.msra.gmra.mrb[8].mxu0 %vm973_vm3, %v274_v10  ;;  %v3275_v35 = vld [vmem:[%s3357_s1 + $0x28] sm:$0xff] }
 0x179   : > { %2294 = vmatmul.mubr.msk.f32.vlgmr.msra.gmra.mrb[8].mxu1 %vm973_vm3, %v274_v10  ;;  %1227 = vmatprep.mubr.f32.mxu0 %v2822_v9 }
 0x17a   : > { %1304 = vmatprep.mubr.f32.mxu1 %v2822_v9 }
 0x17c   : > { %2291 = vmatmul.mubr.msk.f32.gmra.mrb[10].mxu0 %vm973_vm3, %v275_v1 }
 0x17d   : > { %2295 = vmatmul.mubr.msk.f32.gmra.mrb[10].mxu1 %vm973_vm3, %v275_v1  ;;  %1431 = vmatprep.mubr.f32.mxu0 %v2822_v9 }
 0x17e   : > { %1508 = vmatprep.mubr.f32.mxu1 %v2822_v9 }
 0x20b   : > { %v1069_v40 = vpop.f32.mrb[4].mxu0 }
 0x20c   : > { %v1146_v41 = vpop.f32.mrb[4].mxu1  ;;  %v1071_v42 = vpop.f32.mrb[5].mxu0  ;;  %v1070_v43 = vadd.f32 %v1069_v40, %v966_v39 }
 0x20d   : > { %v1148_v44 = vpop.f32.mrb[5].mxu1  ;;  %v1072_v46 = vadd.f32 %v1071_v42, %v966_v39  ;;  %v1147_v47 = vadd.f32 %v1146_v41, %v966_v39 }
 0x20e   : > { %v1149_v48 = vadd.f32 %v1148_v44, %v966_v39  ;;  %v1311_v53 = vmax.f32 %v1070_v43, 0.0 }
 0x20f   : > { %v1075_v49 = vpop.f32.mrb[6].mxu0  ;;  %v1312_v55 = vmax.f32 %v1072_v46, 0.0  ;;  %v1313_v58 = vmax.f32 %v1147_v47, 0.0 }
 0x210   : > { %v1152_v50 = vpop.f32.mrb[6].mxu1  ;;  %v1077_v51 = vpop.f32.mrb[7].mxu0  ;;  %v1076_v52 = vadd.f32 %v1075_v49, %v971_v45  ;;  %v1314_v60 = vmax.f32 %v1149_v48, 0.0 }
 0x211   : > { %v1078_v54 = vadd.f32 %v1077_v51, %v971_v45  ;;  %v1154_v56 = vpop.f32.mrb[7].mxu1  ;;  %v1153_v57 = vadd.f32 %v1152_v50, %v971_v45 }
 0x212   : > { %v1155_v59 = vadd.f32 %v1154_v56, %v971_v45  ;;  %v1319_v61 = vmax.f32 %v1076_v52, 0.0 }
 0x213   : > { %v1320_v62 = vmax.f32 %v1078_v54, 0.0  ;;  %v1321_v63 = vmax.f32 %v1153_v57, 0.0 }
 0x214   : > { %v1322_v2 = vmax.f32 %v1155_v59, 0.0  ;;  %v2661_v4 = vpack.c.bf16 %v1319_v61, %v1311_v53 }
 0x215   : > { %v2658_v5 = vpack.c.bf16 %v1320_v62, %v1312_v55  ;;  %v2667_v6 = vpack.c.bf16 %v1321_v63, %v1313_v58 }
 0x216   : > { %v2664_v7 = vpack.c.bf16 %v1322_v2, %v1314_v60 }
 0x217   : > { %2660 = vmatprep.subr.msk.bf16.mxu0 %vm3228_vm6, %v2658_v5 }
 0x218   : > { %2666 = vmatprep.subr.msk.bf16.mxu1 %vm3228_vm6, %v2664_v7  ;;  %2663 = vmatpush1.bf16.msk.msra.mxu0 %vm3228_vm6, %v2661_v4 }
 0x219   : > { %2669 = vmatpush1.bf16.msk.msra.mxu1 %vm3228_vm6, %v2667_v6 }
 0x21b   : > { %2298 = vmatmul.mubr.msk.f32.vlgmr.msra.gmra.mrb[12].mxu0 %vm1337_vm7, %v3217_v36 }
 0x21c   : > { %2302 = vmatmul.mubr.msk.f32.vlgmr.msra.gmra.mrb[12].mxu1 %vm1337_vm7, %v3217_v36  ;;  %1437 = vmatprep.mubr.f32.mxu0 %v2822_v9 }
 0x21d   : > { %1514 = vmatprep.mubr.f32.mxu1 %v2822_v9 }
 0x21f   : > { %2299 = vmatmul.mubr.msk.f32.gmra.mrb[14].mxu0 %vm1337_vm7, %v3223_v38 }
 0x220   : > { %2303 = vmatmul.mubr.msk.f32.gmra.mrb[14].mxu1 %vm1337_vm7, %v3223_v38  ;;  %1585 = vmatprep.mubr.f32.mxu0 %v2822_v9 }
 0x221   : > { %1662 = vmatprep.mubr.f32.mxu1 %v2822_v9 }
 0x24b   : > { %v1223_v8 = vpop.f32.mrb[8].mxu0 }
 0x24c   : > { %v1300_v10 = vpop.f32.mrb[8].mxu1  ;;  %v1225_v1 = vpop.f32.mrb[9].mxu0  ;;  %v1224_v12 = vadd.f32 %v1223_v8, %v966_v39 }
 0x24d   : > { %v1302_v11 = vpop.f32.mrb[9].mxu1  ;;  %v1301_v0 = vadd.f32 %v1300_v10, %v966_v39  ;;  %v1226_v13 = vadd.f32 %v1225_v1, %v966_v39 }
 0x24e   : > { %v1303_v15 = vadd.f32 %v1302_v11, %v966_v39  ;;  %v1315_v22 = vmax.f32 %v1224_v12, 0.0 }
 0x24f   : > { %v1229_v14 = vpop.f32.mrb[10].mxu0  ;;  %v1317_v25 = vmax.f32 %v1301_v0, 0.0  ;;  %v1316_v26 = vmax.f32 %v1226_v13, 0.0 }
 0x250   : > { %v1230_v16 = vadd.f32 %v1229_v14, %v971_v45  ;;  %v1306_v17 = vpop.f32.mrb[10].mxu1  ;;  %v1231_v18 = vpop.f32.mrb[11].mxu0  ;;  %v1318_v29 = vmax.f32 %v1303_v15, 0.0 }
 0x251   : > { %v1307_v19 = vadd.f32 %v1306_v17, %v971_v45  ;;  %v1232_v20 = vadd.f32 %v1231_v18, %v971_v45  ;;  %v1308_v21 = vpop.f32.mrb[11].mxu1 }
 0x252   : > { %v1323_v23 = vmax.f32 %v1230_v16, 0.0  ;;  %v1309_v24 = vadd.f32 %v1308_v21, %v971_v45  ;;  %v1335_v45 = vpop.permute.xlu1 %1334 }
 0x253   : > { %v1325_v27 = vmax.f32 %v1307_v19, 0.0  ;;  %v1324_v28 = vmax.f32 %v1232_v20, 0.0 }
 0x254   : > { %v2673_v30 = vpack.c.bf16 %v1323_v23, %v1315_v22  ;;  %v1326_v31 = vmax.f32 %v1309_v24, 0.0 }
 0x255   : > { %v2679_v32 = vpack.c.bf16 %v1325_v27, %v1317_v25  ;;  %v2670_v33 = vpack.c.bf16 %v1324_v28, %v1316_v26 }
 0x256   : > { %v2676_v34 = vpack.c.bf16 %v1326_v31, %v1318_v29 }
 0x257   : > { %2672 = vmatprep.subr.msk.bf16.mxu0 %vm3228_vm6, %v2670_v33 }
 0x258   : > { %2678 = vmatprep.subr.msk.bf16.mxu1 %vm3228_vm6, %v2676_v34  ;;  %2675 = vmatpush1.bf16.msk.msra.mxu0 %vm3228_vm6, %v2673_v30  ;;  %v2023_v34 = vlaneseq }
 0x259   : > { %2681 = vmatpush1.bf16.msk.msra.mxu1 %vm3228_vm6, %v2679_v32  ;;  %v2827_v32 = vmov 1966171168  }
 0x25a   : > { %v2021_v33 = vunpack.c.l.s4 %v2827_v32 }
 0x25b   : > { %2306 = vmatmul.mubr.msk.f32.vlgmr.msra.gmra.mrb[16].mxu0 %vm1337_vm7, %v3217_v36 }
 0x25c   : > { %2310 = vmatmul.mubr.msk.f32.vlgmr.msra.gmra.mrb[16].mxu1 %vm1337_vm7, %v3217_v36  ;;  %1591 = vmatprep.mubr.f32.mxu0 %v2822_v9  ;;  %v2826_v36 = vmov 15  }
 0x25d   : > { %1668 = vmatprep.mubr.f32.mxu1 %v2822_v9  ;;  %2756 = vset.pattern.permute.xlu0 %v2826_v36 }
 0x25e   : > { %1693 = vperm.xlu0 %2756, %v3275_v35  }
 0x25f   : > { %2307 = vmatmul.mubr.msk.f32.gmra.mrb[18].mxu0 %vm1337_vm7, %v3223_v38 }
 0x260   : > { %2311 = vmatmul.mubr.msk.f32.gmra.mrb[18].mxu1 %vm1337_vm7, %v3223_v38  ;;  %1788 = vmatprep.mubr.f32.mxu0 %v2822_v9 }
 0x261   : > { %1859 = vmatprep.mubr.f32.mxu1 %v2822_v9 }
 0x2dd   : > { %v1694_v36 = vpop.permute.xlu0 %1693 }
 0x2ee   : > { %v1433_v39 = vpop.f32.mrb[12].mxu0 }
 0x2ef   : > { %v1434_v40 = vadd.f32 %v1433_v39, %v1330_v37  ;;  %v1510_v41 = vpop.f32.mrb[12].mxu1  ;;  %v1435_v42 = vpop.f32.mrb[13].mxu0  ;;  %v2024_v39 = vshrl.u32 %v2023_v34, 7 }
 0x2f0   : > { %v1511_v43 = vadd.f32 %v1510_v41, %v1330_v37  ;;  %v1436_v38 = vadd.f32 %v1435_v42, %v1330_v37  ;;  %v1512_v44 = vpop.f32.mrb[13].mxu1 }
 0x2f1   : > { %v1513_v46 = vadd.f32 %v1512_v44, %v1330_v37  ;;  %v1675_v48 = vmax.f32 %v1434_v40, 0.0 }
 0x2f2   : > { %v1439_v47 = vpop.f32.mrb[14].mxu0  ;;  %v1677_v52 = vmax.f32 %v1511_v43, 0.0  ;;  %v1676_v53 = vmax.f32 %v1436_v38, 0.0 }
 0x2f3   : > { %v1516_v49 = vpop.f32.mrb[14].mxu1  ;;  %v1441_v50 = vpop.f32.mrb[15].mxu0  ;;  %v1440_v51 = vadd.f32 %v1439_v47, %v1335_v45  ;;  %v1678_v57 = vmax.f32 %v1513_v46, 0.0 }
 0x2f4   : > { %v1442_v54 = vadd.f32 %v1441_v50, %v1335_v45  ;;  %v1518_v55 = vpop.f32.mrb[15].mxu1  ;;  %v1517_v56 = vadd.f32 %v1516_v49, %v1335_v45 }
 0x2f5   : > { %v1519_v58 = vadd.f32 %v1518_v55, %v1335_v45  ;;  %v1683_v59 = vmax.f32 %v1440_v51, 0.0 }
 0x2f6   : > { %v1684_v60 = vmax.f32 %v1442_v54, 0.0  ;;  %v1685_v61 = vmax.f32 %v1517_v56, 0.0 }
 0x2f7   : > { %v1686_v62 = vmax.f32 %v1519_v58, 0.0  ;;  %v2685_v2 = vpack.c.bf16 %v1683_v59, %v1675_v48 }
 0x2f8   : > { %v2682_v3 = vpack.c.bf16 %v1684_v60, %v1676_v53  ;;  %v2691_v4 = vpack.c.bf16 %v1685_v61, %v1677_v52 }
 0x2f9   : > { %v2688_v5 = vpack.c.bf16 %v1686_v62, %v1678_v57 }
 0x2fa   : > { %2684 = vmatprep.subr.msk.bf16.mxu0 %vm3279_vm9, %v2682_v3 }
 0x2fb   : > { %2690 = vmatprep.subr.msk.bf16.mxu1 %vm3279_vm9, %v2688_v5  ;;  %2687 = vmatpush1.bf16.msk.msra.mxu0 %vm3279_vm9, %v2685_v2 }
 0x2fc   : > { %2693 = vmatpush1.bf16.msk.msra.mxu1 %vm3279_vm9, %v2691_v4 }
 0x2fe   : > { %2314 = vmatmul.mubr.msk.f32.vlgmr.msra.gmra.mrb[20].mxu0 %vm1696_vm10, %v3275_v35 }
 0x2ff   : > { %2317 = vmatmul.mubr.msk.f32.vlgmr.msra.gmra.mrb[20].mxu1 %vm1696_vm10, %v3275_v35  ;;  %1930 = vmatprep.mubr.f32.mxu0 %v2822_v9 }
 0x300   : > { %2001 = vmatprep.mubr.f32.mxu1 %v2822_v9 }
 0x32e   : > { %v1587_v6 = vpop.f32.mrb[16].mxu0 }
 0x32f   : > { %v1664_v7 = vpop.f32.mrb[16].mxu1  ;;  %v1589_v8 = vpop.f32.mrb[17].mxu0  ;;  %v1588_v1 = vadd.f32 %v1587_v6, %v1330_v37 }
 0x330   : > { %v1666_v10 = vpop.f32.mrb[17].mxu1  ;;  %v1665_v11 = vadd.f32 %v1664_v7, %v1330_v37  ;;  %v1590_v12 = vadd.f32 %v1589_v8, %v1330_v37 }
 0x331   : > { %v1667_v13 = vadd.f32 %v1666_v10, %v1330_v37  ;;  %v1679_v20 = vmax.f32 %v1588_v1, 0.0  ;;  %v2022_v37 = vunpack.c.0.s8 %v2021_v33 }
 0x332   : > { %v1593_v0 = vpop.f32.mrb[18].mxu0  ;;  %v1681_v23 = vmax.f32 %v1665_v11, 0.0  ;;  %v1680_v9 = vmax.f32 %v1590_v12, 0.0 }
 0x333   : > { %v1594_v14 = vadd.f32 %v1593_v0, %v1335_v45  ;;  %v1670_v15 = vpop.f32.mrb[18].mxu1  ;;  %v1595_v16 = vpop.f32.mrb[19].mxu0  ;;  %v1682_v26 = vmax.f32 %v1667_v13, 0.0  ;;  %v2025_v44 = vsub.s32 %v2022_v37, %v2024_v39 }
 0x334   : > { %v1671_v17 = vadd.f32 %v1670_v15, %v1335_v45  ;;  %v1596_v18 = vadd.f32 %v1595_v16, %v1335_v45  ;;  %v1672_v19 = vpop.f32.mrb[19].mxu1 }
 0x335   : > { %v1687_v21 = vmax.f32 %v1594_v14, 0.0  ;;  %v1673_v22 = vadd.f32 %v1672_v19, %v1335_v45 }
 0x336   : > { %v1689_v24 = vmax.f32 %v1671_v17, 0.0  ;;  %v1688_v25 = vmax.f32 %v1596_v18, 0.0 }
 0x337   : > { %v2697_v27 = vpack.c.bf16 %v1687_v21, %v1679_v20  ;;  %v1690_v28 = vmax.f32 %v1673_v22, 0.0 }
 0x338   : > { %v2703_v29 = vpack.c.bf16 %v1689_v24, %v1681_v23  ;;  %v2694_v30 = vpack.c.bf16 %v1688_v25, %v1680_v9 }
 0x339   : > { %v2700_v31 = vpack.c.bf16 %v1690_v28, %v1682_v26 }
 0x33a   : > { %2696 = vmatprep.subr.msk.bf16.mxu0 %vm3279_vm9, %v2694_v30 }
 0x33b   : > { %2702 = vmatprep.subr.msk.bf16.mxu1 %vm3279_vm9, %v2700_v31  ;;  %2699 = vmatpush1.bf16.msk.msra.mxu0 %vm3279_vm9, %v2697_v27 }
 0x33c   : > { %2705 = vmatpush1.bf16.msk.msra.mxu1 %vm3279_vm9, %v2703_v29 }
 0x33e   : > { %2320 = vmatmul.mubr.msk.f32.vlgmr.msra.gmra.mrb[22].mxu0 %vm1696_vm10, %v3275_v35 }
 0x33f   : > { %2323 = vmatmul.mubr.msk.f32.vlgmr.msra.gmra.mrb[22].mxu1 %vm1696_vm10, %v3275_v35 }
 0x3d1   : > { %v1790_v40 = vpop.f32.mrb[20].mxu0 }
 0x3d2   : > { %v1861_v41 = vpop.f32.mrb[20].mxu1  ;;  %v1792_v42 = vpop.f32.mrb[21].mxu0  ;;  %v1791_v43 = vadd.f32 %v1790_v40, %v1694_v36 }
 0x3d3   : > { %v1863_v38 = vpop.f32.mrb[21].mxu1  ;;  %v1793_v45 = vadd.f32 %v1792_v42, %v1694_v36  ;;  %v1862_v46 = vadd.f32 %v1861_v41, %v1694_v36 }
 0x3d4   : > { %v1864_v47 = vadd.f32 %v1863_v38, %v1694_v36 }
 0x3d5   : > { %v2016_v48 = vcombine.low %v1791_v43, %v1793_v45 }
 0x3d6   : > { %v2017_v49 = vcombine.low %v1862_v46, %v1864_v47 }
 0x3d7   : > { %v2026_v50 = vrot.slane %v2016_v48, %v2025_v44 }
 0x3d8   : > { %v2033_v35 = vrot.slane %v2017_v49, %v2025_v44 }
 0x3da   : > { %v2048_v51 = vcombine.low %v2026_v50, %v2033_v35 }
 0x3dc   : > { %v2056_v3 = vrot.slane %v2048_v51, %v2025_v44 }
 0x411   : > { %v1932_v52 = vpop.f32.mrb[22].mxu0 }
 0x412   : > { %v2003_v53 = vpop.f32.mrb[22].mxu1  ;;  %v1933_v54 = vadd.f32 %v1932_v52, %v1694_v36  ;;  %v1934_v55 = vpop.f32.mrb[23].mxu0 }
 0x413   : > { %v1935_v56 = vadd.f32 %v1934_v55, %v1694_v36  ;;  %v2004_v57 = vadd.f32 %v2003_v53, %v1694_v36  ;;  %v2005_v58 = vpop.f32.mrb[23].mxu1 }
 0x414   : > { %v2006_v59 = vadd.f32 %v2005_v58, %v1694_v36 }
 0x415   : > { %v2018_v60 = vcombine.low %v1933_v54, %v1935_v56 }
 0x416   : > { %v2019_v61 = vcombine.low %v2004_v57, %v2006_v59 }
 0x417   : > { %v2040_v62 = vrot.slane %v2018_v60, %v2025_v44 }
 0x418   : > { %v2047_v63 = vrot.slane %v2019_v61, %v2025_v44 }
 0x41a   : > { %v2049_v2 = vcombine.low %v2040_v62, %v2047_v63 }
 0x41c   : > { %v2063_v4 = vrot.slane %v2049_v2, %v2025_v44 }
 0x41e   : > { %v2064_v5 = vcombine.low %v2056_v3, %v2063_v4 }
 0x420   : > { %2066 = vst [vmem:[%s137_s22] sm:$0xff] %v2064_v5 }
 0x421   : > { %2770 = shalt.err (!%p2767_p3)
}
 0x422   : > { %s2771_s21 = scalar_lea.hbm %s3314_s26, 128  ;;  %s2775_s6 = scalar_lea.hbm %s3358_s2, 256 }
 0x423   : > { %p2772_p4 = scmp.ne.s32.totalorder %s3314_s26, %s2771_s21  ;;  %p2776_p9 = scmp.lt.u32.totalorder %s3314_s26, %s3358_s2 }
 0x424   : > { %p2777_p10 = scmp.lt.u32.totalorder %s2775_s6, %s2771_s21  ;;  %p2779_p12 = scmp.lt.u32.totalorder %s2771_s21, %s3314_s26 }
 0x425   : > { %p2773_p7 = pnand %p2772_p4, %p2879_p5 }
 0x426   : > { %p2778_p11 = por %p2777_p10, %p2776_p9 }
 0x427   : > { %p2774_p8 = pneg %p2773_p7 }
 0x428   : > { %p2780_p13 = por %p2779_p12, %p2778_p11 }
 0x42a   : > { %p2781_p0 = pnand %p2780_p13, %p2774_p8 }
 0x42c   : > { %2784 = shalt.err (!%p2781_p0)
}
 0x42d   : > { %2706 = dma.vmem_to_hbm [thread:$0]  (%p2879_p5), %s3316_s23, 128, %s3314_s26, %s2068_s27  }
 0x42e PF: > { %p2712_p1 = scmp.ge.s32.totalorder %s2819_s12, 2  ;;  %s2094_s13 = sand.u32 1, %s2807_s9  }
 0x42f   : > { %s2095_s14 = scalar_lea.sflag [#allocation3], %s2094_s13 }
 0x430   : > { %p2709_p2 = pnand %p2712_p1, %p2883_p6 }
 0x432   : > { %2802 = dma.done.wait (!%p2709_p2), %s2095_s14, 128  }
 0x433   : > { %2804 = vsyncadd (!%p2709_p2), %s2095_s14, 4294967168  ;;  %p12_p3 = scmp.ge.s32.totalorder %s2867_s15, 4   ;;  %s3367_s9 = smov %s2811_s10 }
 0x434   : > { %s3368_s10 = smov %s2815_s11  ;;  %s3369_s11 = smov %s2877_s18 }
 0x435   : > { %s3370_s12 = smov %s2867_s15  ;;  %14 = sbr.rel (!%p12_p3) target bundleno = 3 (0x3), region = 63 }
 0x43c   :  { %2100 = vsyncpa [#allocation3], 1 }
 0x43d   :  { %2102 = vsyncpa [#allocation3 + $0x1], 1 }

</bundles_post_ra>
